<compile_context>
chip_gen: v7x
topology: tpu7x:2x2x1
jax: 0.10.0
libtpu: 0.0.40
codegen_flags: <defaults>
</compile_context>

<pallas_src>
import functools

import jax
import jax.numpy as jnp
from jax.experimental import pallas as pl
from jax.experimental.pallas import tpu as pltpu


_COMPUTE_DTYPE = jnp.bfloat16   # streamed weights/activations (accumulation f32)


def _round_up(x, m):
    return (x + m - 1) // m * m


# ----------------------------------------------------------------------------
# Generation-aware tiling policy (derived once at import time).
# ----------------------------------------------------------------------------
def _detect_device():
    try:
        kind = jax.devices()[0].device_kind.lower().replace(" ", "")
    except Exception:
        kind = ""
    is_v7 = ("v7" in kind) or ("tpu7" in kind)
    is_v6 = ("v6" in kind) or ("tpu6" in kind)
    return kind, is_v6, is_v7


_DEVICE_KIND, _IS_V6, _IS_V7 = _detect_device()

# Max fc_pre K-tile:  25088 = 49*512 = 28*896 = 14*1792.  Bigger K-tiles cut
# the number of grid steps (critical on v7x's 3.2 TB/s HBM where TK=512 is a
# ~25% per-step-overhead tax); on v5e the per-step DMA already hides the
# overhead, so stay at 512 there (and on unknown chips).
_MAX_TK = 1792 if (_IS_V6 or _IS_V7) else 512

# Max batch tile: large enough that typical ROI batches are a single tile, so
# the dominant fc_pre weight stream is read from HBM exactly once.  v6e
# (128 MiB VMEM) can combine 1024-row tiles with TK=1792; v7x (64 MiB VMEM)
# must not, so cap at 512 there (and on v5e / unknown).
_MAX_TB = 1024 if _IS_V6 else 512


def _vmem_capacity_bytes():
    try:
        cap = int(pltpu.get_tpu_info().vmem_capacity_bytes)
        if cap > 0:
            return cap
    except Exception:
        pass
    return (64 << 20) if _IS_V7 else (128 << 20)


def _vmem_bytes_estimate(tb, tk, hid, headp, cbytes=2):
    """Double-buffered pipeline buffers + resident accumulator scratch."""
    x_tile = tb * tk * cbytes * 2
    w_pre = tk * hid * cbytes * 2
    b_pre = hid * 4 * 2
    w_head = hid * headp * cbytes * 2
    b_head = headp * 4 * 2
    out_tile = tb * headp * 4 * 2
    acc = tb * hid * 4
    return x_tile + w_pre + b_pre + w_head + b_head + out_tile + acc


def _choose_tk(in_features):
    """Largest TPU-friendly K tile (<= generation policy) dividing padded IN."""
    for cand in (1792, 896, 512, 256, 128):
        if cand <= _MAX_TK and in_features % cand == 0:
            return cand, in_features
    return 128, _round_up(in_features, 128)


# ----------------------------------------------------------------------------
# Kernel
# ----------------------------------------------------------------------------
def roi_head_kernel(x_ref, w_pre_ref, b_pre_ref, w_head_ref, b_head_ref,
                    out_ref, feat_acc):
    """grid = (batch tiles, fc_pre K tiles); K is innermost / "arbitrary"."""
    k = pl.program_id(1)

    @pl.when(k == 0)
    def _():
        # fc_pre bias (kept in f32) folded into the accumulator init.
        feat_acc[...] = jnp.broadcast_to(b_pre_ref[...], feat_acc.shape)

    # fc_pre partial product for this K tile (bf16 MXU, f32 accumulate).
    feat_acc[...] += jnp.dot(x_ref[...], w_pre_ref[...],
                             preferred_element_type=jnp.float32)

    @pl.when(k == pl.num_programs(1) - 1)
    def _():
        # Packed cls|loc head: one small matmul on the resident accumulator,
        # f32 bias add, lane-dense 128-wide store.
        feat = feat_acc[...].astype(w_head_ref.dtype)
        out_ref[...] = (jnp.dot(feat, w_head_ref[...],
                                preferred_element_type=jnp.float32)
                        + b_head_ref[...]).astype(out_ref.dtype)


# ----------------------------------------------------------------------------
# Parameter packing (outside the jitted forward)
# ----------------------------------------------------------------------------
def pack_roi_head_params(params, n_classes, compute_dtype=_COMPUTE_DTYPE):
    """Pad/pack raw params once.

    Returns (w_pre, b_pre, w_head, b_head):
      w_pre  (INp, HID)    bf16   (streamed)
      b_pre  (1, HID)      f32
      w_head (HID, HEADp)  bf16   -- cls columns [0:C], loc columns [C:5C]
      b_head (1, HEADp)    f32
    """
    w_pre, b_pre, w_cls, b_cls, w_loc, b_loc = params
    IN, HID = w_pre.shape
    C = n_classes + 1
    HEAD = 5 * C
    HEADp = _round_up(HEAD, 128)
    _, INp = _choose_tk(IN)
    assert HID % 128 == 0, "hidden width must be a multiple of 128"

    # Streamed weights in bf16 (halves the dominant HBM traffic); tiny biases
    # stay in f32 -- zero bandwidth cost, no precision loss in the bias fold.
    w_pre_p = jnp.zeros((INp, HID), compute_dtype).at[:IN].set(
        w_pre.astype(compute_dtype))
    b_pre_p = b_pre.astype(jnp.float32)[None, :]

    w_head = jnp.zeros((HID, HEADp), compute_dtype)
    w_head = w_head.at[:, :C].set(w_cls.astype(compute_dtype))
    w_head = w_head.at[:, C:HEAD].set(w_loc.astype(compute_dtype))
    b_head = jnp.zeros((1, HEADp), jnp.float32)
    b_head = b_head.at[0, :C].set(b_cls.astype(jnp.float32))
    b_head = b_head.at[0, C:HEAD].set(b_loc.astype(jnp.float32))
    return (w_pre_p, b_pre_p, w_head, b_head)


# ----------------------------------------------------------------------------
# Forward
# ----------------------------------------------------------------------------
@functools.partial(jax.jit, static_argnames=("n_classes",))
def roi_head_forward(x, packed_params, n_classes):
    """x: (B, IN) flattened ROI features.  Returns (cls (B,C), loc (B,C,4))."""
    w_pre, b_pre, w_head, b_head = packed_params
    B, IN = x.shape
    INp, HID = w_pre.shape
    C = n_classes + 1
    HEAD = 5 * C
    HEADp = w_head.shape[1]
    cdtype = w_pre.dtype

    TK, INp_chk = _choose_tk(IN)
    assert INp_chk == INp, "packed w_pre does not match input feature width"

    # Batch tile: as big as the per-generation VMEM budget allows so large ROI
    # batches stream the fc_pre weight from HBM only once.
    cap = _vmem_capacity_bytes()
    budget = int(0.85 * cap)
    tb_max = 128
    for cand in (1024, 512, 256, 128):
        if cand <= _MAX_TB and _vmem_bytes_estimate(cand, TK, HID, HEADp) <= budget:
            tb_max = cand
            break

    Bp = _round_up(B, 8)
    if Bp <= tb_max:
        TB = Bp                        # whole batch in one tile
    else:
        TB = tb_max
        Bp = _round_up(B, TB)

    # Skip the padded copy of x when no padding is needed (common full-size
    # case: IN = 25088 divisible by TK and B a multiple of the tile).
    if B == Bp and IN == INp:
        x_p = x.astype(cdtype)
    else:
        x_p = jnp.zeros((Bp, INp), cdtype).at[:B, :IN].set(x.astype(cdtype))

    # vmem limit derived from the actual buffer footprint (+25% headroom for
    # compiler-internal scratch), clamped to the chip's physical VMEM.
    vmem_limit = int(min(cap,
                         max(32 << 20,
                             _vmem_bytes_estimate(TB, TK, HID, HEADp) * 5 // 4)))

    # NOTE: the batch axis is marked "parallel" (harmless on 1-TC chips).  On
    # v7x a HID-split across the two TensorCores would halve each core's
    # weight stream; not implemented here to keep a single fused kernel.
    # Weight-only int8 (v5e/v6e) / fp8 (v7x) quantization of w_pre is a
    # further ~2x bandwidth lever, intentionally not applied to keep bf16
    # accuracy of the detection logits.
    grid = (Bp // TB, INp // TK)
    out_p = pl.pallas_call(
        roi_head_kernel,
        out_shape=jax.ShapeDtypeStruct((Bp, HEADp), jnp.float32),
        grid_spec=pltpu.PrefetchScalarGridSpec(
            num_scalar_prefetch=0,
            grid=grid,
            in_specs=[
                pl.BlockSpec((TB, TK),     lambda b, k: (b, k)),   # x tile
                pl.BlockSpec((TK, HID),    lambda b, k: (k, 0)),   # w_pre tile
                pl.BlockSpec((1, HID),     lambda b, k: (0, 0)),   # b_pre (f32)
                pl.BlockSpec((HID, HEADp), lambda b, k: (0, 0)),   # packed head W
                pl.BlockSpec((1, HEADp),   lambda b, k: (0, 0)),   # packed head b
            ],
            out_specs=pl.BlockSpec((TB, HEADp), lambda b, k: (b, 0)),
            scratch_shapes=[pltpu.VMEM((TB, HID), jnp.float32)],
        ),
        compiler_params=pltpu.CompilerParams(
            dimension_semantics=("parallel", "arbitrary"),
            vmem_limit_bytes=vmem_limit),
    )(x_p, w_pre, b_pre, w_head, b_head)

    cls = out_p[:B, :C].astype(x.dtype)
    loc = out_p[:B, C:HEAD].astype(x.dtype).reshape(B, C, 4)
    return cls, loc


# ----------------------------------------------------------------------------
# Init + test
# ----------------------------------------------------------------------------
def init_roi_head_params(key, in_features, hidden, n_classes, dtype=jnp.float32):
    """Matches PyTorch __init__: weights ~ N(0, 0.01), biases = 0.
    PyTorch Linear stores W as (out, in); we store W^T (in, out) for x @ W."""
    C = n_classes + 1
    k1, k2, k3 = jax.random.split(key, 3)
    w_pre = (0.01 * jax.random.normal(k1, (in_features, hidden))).astype(dtype)
    b_pre = jnp.zeros((hidden,), dtype)
    w_cls = (0.01 * jax.random.normal(k2, (hidden, C))).astype(dtype)
    b_cls = jnp.zeros((C,), dtype)
    w_loc = (0.01 * jax.random.normal(k3, (hidden, C * 4))).astype(dtype)
    b_loc = jnp.zeros((C * 4,), dtype)
    return (w_pre, b_pre, w_cls, b_cls, w_loc, b_loc)


def _reference(x, params, n_classes):
    w_pre, b_pre, w_cls, b_cls, w_loc, b_loc = params
    feat = x @ w_pre + b_pre
    cls = feat @ w_cls + b_cls
    loc = (feat @ w_loc + b_loc).reshape(x.shape[0], n_classes + 1, 4)
    return cls, loc


if __name__ == "__main__":
    # Scaled-down shapes consistent with the module (original IN=25088=512*7*7,
    # HID=4096 -> here IN=1024=64*4*4, HID=256).  Two K-steps exercise the
    # resident-accumulator path.
    B, Cin, Hsp, Wsp = 2, 64, 4, 4
    IN = Cin * Hsp * Wsp             # 1024
    HID = 256
    N_CLASSES = 20                   # -> 21 cls logits, 84 loc values

    key = jax.random.PRNGKey(0)
    k_x, k_p, k_x2 = jax.random.split(key, 3)
    feat_nchw = jax.random.normal(k_x, (B, Cin, Hsp, Wsp), jnp.float32)
    x = feat_nchw.reshape(B, -1)     # feat.view(bsize, -1)

    params = init_roi_head_params(k_p, IN, HID, N_CLASSES)
    packed = pack_roi_head_params(params, N_CLASSES)

    cls, loc = roi_head_forward(x, packed, N_CLASSES)
    jax.block_until_ready((cls, loc))

    # Pure-JAX f32 reference (kernel streams bf16 -> allow ~1e-2 deviation).
    cls_ref, loc_ref = _reference(x, params, N_CLASSES)
    assert cls.shape == (B, N_CLASSES + 1) and loc.shape == (B, N_CLASSES + 1, 4)
    assert jnp.allclose(cls, cls_ref, atol=2e-2, rtol=2e-2)
    assert jnp.allclose(loc, loc_ref, atol=2e-2, rtol=2e-2)

    # Second check: ROI-sized batch spanning multiple batch tiles on every
    # generation -- validates accumulator re-init / output writeback gating
    # across batch tiles and the padded / non-padded x paths.
    B2 = 1536
    x2 = jax.random.normal(k_x2, (B2, IN), jnp.float32)
    cls2, loc2 = roi_head_forward(x2, packed, N_CLASSES)
    jax.block_until_ready((cls2, loc2))
    cls2_ref, loc2_ref = _reference(x2, params, N_CLASSES)
    assert cls2.shape == (B2, N_CLASSES + 1) and loc2.shape == (B2, N_CLASSES + 1, 4)
    assert jnp.allclose(cls2, cls2_ref, atol=2e-2, rtol=2e-2)
    assert jnp.allclose(loc2, loc2_ref, atol=2e-2, rtol=2e-2)

    print("KERNEL_OK")
</pallas_src>

<mosaic_0001>
module attributes {stable_mosaic.version = 11 : i64} {
  func.func @roi_head_kernel(%arg0: i32, %arg1: i32, %arg2: memref<8x512xbf16, #tpu.memory_space<vmem>>, %arg3: memref<512x256xbf16, #tpu.memory_space<vmem>>, %arg4: memref<1x256xf32, #tpu.memory_space<vmem>>, %arg5: memref<256x128xbf16, #tpu.memory_space<vmem>>, %arg6: memref<1x128xf32, #tpu.memory_space<vmem>>, %arg7: memref<8x128xf32, #tpu.memory_space<vmem>>, %arg8: memref<8x256xf32, #tpu.memory_space<vmem>>) attributes {dimension_semantics = [#tpu.dimension_semantics<parallel>, #tpu.dimension_semantics<arbitrary>], iteration_bounds = array<i64: 1, 2>, scalar_prefetch = 0 : i64, scratch_operands = 1 : i64, tpu.core_type = #tpu.core_type<tc>, window_params = [{transform_indices = @transform_0, window_bounds = array<i64: 8, 512>}, {transform_indices = @transform_1, window_bounds = array<i64: 512, 256>}, {pipeline_mode = #tpu.pipeline_mode<synchronous>, transform_indices = @transform_2, window_bounds = array<i64: 1, 256>}, {pipeline_mode = #tpu.pipeline_mode<synchronous>, transform_indices = @transform_3, window_bounds = array<i64: 256, 128>}, {pipeline_mode = #tpu.pipeline_mode<synchronous>, transform_indices = @transform_4, window_bounds = array<i64: 1, 128>}, {transform_indices = @transform_5, window_bounds = array<i64: 8, 128>}]} {
    %c0_i32 = arith.constant 0 : i32
    %0 = arith.cmpi eq, %arg1, %c0_i32 : i32
    %1 = arith.extui %0 : i1 to i32
    %c0_i32_0 = arith.constant 0 : i32
    %2 = arith.cmpi ne, %1, %c0_i32_0 : i32
    scf.if %2 {
      %c0_9 = arith.constant 0 : index
      %c0_10 = arith.constant 0 : index
      %12 = vector.load %arg4[%c0_9, %c0_10] : memref<1x256xf32, #tpu.memory_space<vmem>>, vector<1x256xf32>
      %13 = vector.shape_cast %12 : vector<1x256xf32> to vector<1x256xf32>
      %14 = vector.broadcast %13 : vector<1x256xf32> to vector<8x256xf32>
      %c0_11 = arith.constant 0 : index
      %c0_12 = arith.constant 0 : index
      %15 = vector.load %arg8[%c0_11, %c0_12] : memref<8x256xf32, #tpu.memory_space<vmem>>, vector<8x256xf32>
      tpu.vector_store %arg8[%c0_11, %c0_12], %14 {strides = array<i32>} : memref<8x256xf32, #tpu.memory_space<vmem>>, vector<8x256xf32>,
    } else {
    }
    %c0 = arith.constant 0 : index
    %c0_1 = arith.constant 0 : index
    %3 = vector.load %arg8[%c0, %c0_1] : memref<8x256xf32, #tpu.memory_space<vmem>>, vector<8x256xf32>
    %c0_2 = arith.constant 0 : index
    %c0_3 = arith.constant 0 : index
    %4 = vector.load %arg2[%c0_2, %c0_3] : memref<8x512xbf16, #tpu.memory_space<vmem>>, vector<8x512xbf16>
    %c0_4 = arith.constant 0 : index
    %c0_5 = arith.constant 0 : index
    %5 = vector.load %arg3[%c0_4, %c0_5] : memref<512x256xbf16, #tpu.memory_space<vmem>>, vector<512x256xbf16>
    %cst = arith.constant dense<0.000000e+00> : vector<8x256xf32>
    %6 = tpu.matmul %4, %5, %cst {dimension_numbers = #tpu.dot_dimension_numbers<[1], [0], [0], [1], [0, 0, 1, 1], [], []>} : vector<8x512xbf16>, vector<512x256xbf16>, vector<8x256xf32> -> vector<8x256xf32>
    %7 = arith.addf %3, %6 : vector<8x256xf32>
    %c0_6 = arith.constant 0 : index
    %c0_7 = arith.constant 0 : index
    %8 = vector.load %arg8[%c0_6, %c0_7] : memref<8x256xf32, #tpu.memory_space<vmem>>, vector<8x256xf32>
    tpu.vector_store %arg8[%c0_6, %c0_7], %7 {strides = array<i32>} : memref<8x256xf32, #tpu.memory_space<vmem>>, vector<8x256xf32>,
    %c1_i32 = arith.constant 1 : i32
    %9 = arith.cmpi eq, %arg1, %c1_i32 : i32
    %10 = arith.extui %9 : i1 to i32
    %c0_i32_8 = arith.constant 0 : i32
    %11 = arith.cmpi ne, %10, %c0_i32_8 : i32
    scf.if %11 {
      %c0_9 = arith.constant 0 : index
      %c0_10 = arith.constant 0 : index
      %12 = vector.load %arg8[%c0_9, %c0_10] : memref<8x256xf32, #tpu.memory_space<vmem>>, vector<8x256xf32>
      %13 = arith.truncf %12 : vector<8x256xf32> to vector<8x256xbf16>
      %c0_11 = arith.constant 0 : index
      %c0_12 = arith.constant 0 : index
      %14 = vector.load %arg5[%c0_11, %c0_12] : memref<256x128xbf16, #tpu.memory_space<vmem>>, vector<256x128xbf16>
      %cst_13 = arith.constant dense<0.000000e+00> : vector<8x128xf32>
      %15 = tpu.matmul %13, %14, %cst_13 {dimension_numbers = #tpu.dot_dimension_numbers<[1], [0], [0], [1], [0, 0, 1, 1], [], []>} : vector<8x256xbf16>, vector<256x128xbf16>, vector<8x128xf32> -> vector<8x128xf32>
      %c0_14 = arith.constant 0 : index
      %c0_15 = arith.constant 0 : index
      %16 = vector.load %arg6[%c0_14, %c0_15] : memref<1x128xf32, #tpu.memory_space<vmem>>, vector<1x128xf32>
      %17 = vector.broadcast %16 : vector<1x128xf32> to vector<8x128xf32>
      %18 = arith.addf %15, %17 : vector<8x128xf32>
      %c0_16 = arith.constant 0 : index
      %c0_17 = arith.constant 0 : index
      %19 = vector.load %arg7[%c0_16, %c0_17] : memref<8x128xf32, #tpu.memory_space<vmem>>, vector<8x128xf32>
      tpu.vector_store %arg7[%c0_16, %c0_17], %18 {strides = array<i32>} : memref<8x128xf32, #tpu.memory_space<vmem>>, vector<8x128xf32>,
    } else {
    }
    return
  }
  func.func @transform_0(%arg0: i32, %arg1: i32) -> (i32, i32) {
    %c0_i32 = arith.constant 0 : i32
    return %arg0, %arg1 : i32, i32
  }
  func.func @transform_1(%arg0: i32, %arg1: i32) -> (i32, i32) {
    %c0_i32 = arith.constant 0 : i32
    %c0_i32_0 = arith.constant 0 : i32
    return %arg1, %c0_i32 : i32, i32
  }
  func.func @transform_2(%arg0: i32, %arg1: i32) -> (i32, i32) {
    %c0_i32 = arith.constant 0 : i32
    %c0_i32_0 = arith.constant 0 : i32
    %c0_i32_1 = arith.constant 0 : i32
    return %c0_i32, %c0_i32_0 : i32, i32
  }
  func.func @transform_3(%arg0: i32, %arg1: i32) -> (i32, i32) {
    %c0_i32 = arith.constant 0 : i32
    %c0_i32_0 = arith.constant 0 : i32
    %c0_i32_1 = arith.constant 0 : i32
    return %c0_i32, %c0_i32_0 : i32, i32
  }
  func.func @transform_4(%arg0: i32, %arg1: i32) -> (i32, i32) {
    %c0_i32 = arith.constant 0 : i32
    %c0_i32_0 = arith.constant 0 : i32
    %c0_i32_1 = arith.constant 0 : i32
    return %c0_i32, %c0_i32_0 : i32, i32
  }
  func.func @transform_5(%arg0: i32, %arg1: i32) -> (i32, i32) {
    %c0_i32 = arith.constant 0 : i32
    %c0_i32_0 = arith.constant 0 : i32
    return %arg0, %c0_i32 : i32, i32
  }
}

</mosaic_0001>

<bundles_post_ra>
// kernel: roi_head_forward.1
= control target key start
LH: loop header
LB: loop body
LE: loop exit
PB: predicated region body
PF: predicated region fallthrough
CT: control target
= control target key end

     0   :  { %10 = vsyncpa [#allocation4], 0  ;;  %s1798_s0 = inlined_call_operand.vmem [shape: bf16[8,1024], index: 0, kind: input, shape index: {}]   ;;  %s1799_s1 = inlined_call_operand.hbm [shape: bf16[1024,256], index: 1, kind: input, shape index: {}]   ;;  %s1800_s2 = inlined_call_operand.vmem [shape: f32[1,256], index: 2, kind: input, shape index: {}]   ;;  %s1801_s3 = inlined_call_operand.hbm [shape: bf16[256,128], index: 3, kind: input, shape index: {}]   ;;  %s1802_s4 = inlined_call_operand.vmem [shape: f32[1,128], index: 4, kind: input, shape index: {}]   ;;  %s1803_s5 = inlined_call_operand.vmem [shape: f32[8,128], index: 5, kind: output, shape index: {}]  }
   0x1   :  { %12 = vsyncpa [#allocation4 + $0x1], 0 }
   0x2   :  { %13 = vsyncpa [#allocation6], 0  ;;  %s1560_s18 = smov 0   ;;  %s1562_s19 = smov 0  }
   0x3   :  { %s1564_s20 = smov 0   ;;  %s1566_s21 = smov 0  }
   0x4   :  { %s1568_s22 = smov 0   ;;  %s1570_s23 = smov 0  }
   0x5 LB: > { %s1097_s24 = sadd.s32 4294967295, %s1522_s23   ;;  %p79_p0 = scmp.ne.s32.totalorder %s1506_s19, %s1502_s18  ;;  %s1522_s23 = sphi %s1570_s23, %s19_s23   ;;  %s1518_s22 = sphi %s1568_s22, %s1820_s22   ;;  %s1514_s21 = sphi %s1566_s21, %s1819_s21   ;;  %s1510_s20 = sphi %s1564_s20, %s1818_s20   ;;  %s1506_s19 = sphi %s1562_s19, %s1817_s19   ;;  %s1502_s18 = sphi %s1560_s18, %s1816_s18  }
   0x6   : > { %p1590_p1 = scmp.eq.s32.totalorder %s1097_s24, 0  ;;  %p1098_p2 = scmp.ge.s32.totalorder %s1522_s23, 1 }
   0x7   : > { %p179_p3 = scmp.lt.s32.totalorder %s1522_s23, 3  ;;  %s1524_s28 = smov [#allocation5]  }
   0x8   : > { %s1808_s25 = scalar_select %p1590_p1, 1, 0 }
   0x9   : > { %p1598_p4 = por %p1590_p1, %p79_p0  ;;  %p1602_p5 = pnand %p1098_p2, %p179_p3 }
   0xa   : > { %s194_s29 = sshll.u32 %s1524_s28, 4  ;;  %s28_s6 = sadd.s32 1, %s1518_s22  ;;  %s195_s29 = int_to_ptr.vmem [resolvable:$true] %s194_s29 }
   0xb   : > { %s1809_s26 = scalar_select %p1598_p4, 1, 0 }
   0xc   : > { %s1810_s27 = scalar_select %p1602_p5, 1, 0 }
   0xd   : > { %p1230_p6 = pneg %p1602_p5  ;;  %s1410_s9 = scalar_lea.hbm %s1801_s3, 2048 }
   0xe   : > { %p1411_p8 = scmp.ne.s32.totalorder %s1801_s3, %s1410_s9  ;;  %p1417_p12 = scmp.lt.u32.totalorder %s1410_s9, %s1801_s3 }
   0xf   : > { %p1610_p7 = pnand %p1230_p6, %p1590_p1 }
  0x11   : > { %p1412_p9 = pneg %p1610_p7 }
  0x13   : > { %p1413_p10 = pnand %p1412_p9, %p1411_p8 }
  0x15   : > { %p1414_p11 = pneg %p1413_p10 }
  0x17   : > { %p1419_p13 = pnand %p1417_p12, %p1414_p11 }
  0x19   : > { %1422 = shalt.err (!%p1419_p13)
}
  0x1a   : > { %s1423_s14 = scalar_lea.vmem %s195_s29, 2048  ;;  %p1431_p6 = scmp.lt.s32.totalorder %s195_s29, %s195_s29 }
  0x1b   : > { %p1424_p0 = scmp.ne.s32.totalorder %s195_s29, %s1423_s14  ;;  %p1432_p1 = scmp.lt.s32.totalorder %s1423_s14, %s1423_s14 }
  0x1d   : > { %p1426_p2 = pnand %p1424_p0, %p1412_p9  ;;  %p1433_p4 = por %p1432_p1, %p1431_p6 }
  0x1f   : > { %p1427_p3 = pneg %p1426_p2 }
  0x21   : > { %p1434_p5 = pnand %p1433_p4, %p1427_p3 }
  0x23   : > { %1437 = shalt.err (!%p1434_p5)
}
  0x24   : > { %s1525_s15 = smov 64   ;;  %s1526_s16 = smov 4  }
  0x25   : > { %1233 = dma.hbm_to_vmem [thread:$0]  (!%p1610_p7), %s1801_s3, 2048, %s195_s29, [#allocation6], %s1525_s15, %s1525_s15, %s1526_s16  }
  0x26   : > { %p29_p1 = scmp.ge.s32.totalorder %s28_s6, 2  ;;  %s66_s24 = sadd.s32 1, %s1510_s20 }
  0x27   : > { %p73_p4 = scmp.ne.s32.totalorder %s1510_s20, %s1506_s19  ;;  %p74_p5 = scmp.eq.s32.totalorder %s1522_s23, 0 }
  0x28   : > { %s1822_s6 = smov (%p29_p1, %s28_s6), 0  ;;  %p1239_p9 = scmp.lt.s32.totalorder %s1522_s23, 2 }
  0x29   : > { %p75_p8 = por %p74_p5, %p73_p4  ;;  %s63_s28 = ssub.s32 %s1518_s22, %s1822_s6 }
  0x2a   : > { %s224_s7 = sand.u32 1, %s1510_s20   ;;  %p64_p10 = scmp.eq.s32.totalorder %s63_s28, 0 }
  0x2b   : > { %s1101_s8 = sshll.u32 %s224_s7, 9  ;;  %s1201_s9 = sshll.u32 %s1518_s22, 13 }
  0x2c   : > { %s1643_s10 = scalar_select %p64_p10, %s1510_s20, %s66_s24  }
  0x2d   : > { %s1648_s29 = scalar_lea.hbm %s1799_s1, %s1201_s9  ;;  %s228_s12 = scalar_lea.vmem [#allocation3], %s1101_s8 }
  0x2e   : > { %s236_s13 = sshll.u32 %s228_s12, 4  ;;  %p1650_p7 = pnand %p1239_p9, %p75_p8  ;;  %s1654_s13 = int_to_ptr.vmem [resolvable:$true] %s236_s13 }
  0x2f   : > { %s1656_s15 = scalar_lea.sflag [#allocation4], %s224_s7  ;;  %s1438_s16 = scalar_lea.hbm %s1648_s29, 8192 }
  0x30   : > { %p1439_p11 = scmp.ne.s32.totalorder %s1648_s29, %s1438_s16  ;;  %p1440_p12 = pneg %p1650_p7 }
  0x31   : > { %s1443_s24 = scalar_lea.hbm %s1799_s1, 16384  ;;  %p1444_p2 = scmp.lt.u32.totalorder %s1648_s29, %s1799_s1 }
  0x32   : > { %p1441_p13 = pnand %p1440_p12, %p1439_p11  ;;  %p1445_p3 = scmp.lt.u32.totalorder %s1443_s24, %s1438_s16 }
  0x33   : > { %p1447_p1 = scmp.lt.u32.totalorder %s1438_s16, %s1648_s29 }
  0x34   : > { %p1442_p0 = pneg %p1441_p13  ;;  %p1446_p6 = por %p1445_p3, %p1444_p2 }
  0x36   : > { %p1448_p4 = por %p1447_p1, %p1446_p6 }
  0x38   : > { %p1449_p5 = pnand %p1448_p4, %p1442_p0 }
  0x3a   : > { %1452 = shalt.err (!%p1449_p5)
}
  0x3b   : > { %s1453_s7 = scalar_lea.vmem %s1654_s13, 8192  ;;  %s1527_s9 = smov [#allocation3]  }
  0x3c   : > { %p1454_p8 = scmp.ne.s32.totalorder %s1654_s13, %s1453_s7  ;;  %s1458_s30 = sshll.u32 %s1527_s9, 4  ;;  %s1459_s30 = int_to_ptr.vmem [resolvable:$false] %s1458_s30 }
  0x3d   : > { %s1460_s11 = scalar_lea.vmem %s1459_s30, 16384  ;;  %p1461_p11 = scmp.lt.s32.totalorder %s1654_s13, %s1459_s30 }
  0x3e   : > { %p1456_p9 = pnand %p1454_p8, %p1440_p12  ;;  %p1462_p13 = scmp.lt.s32.totalorder %s1460_s11, %s1453_s7 }
  0x40   : > { %p1457_p10 = pneg %p1456_p9  ;;  %p1463_p2 = por %p1462_p13, %p1461_p11 }
  0x42   : > { %p1464_p3 = pnand %p1463_p2, %p1457_p10 }
  0x44   : > { %1467 = shalt.err (!%p1464_p3)
}
  0x45   : > { %s1528_s12 = smov 128   ;;  %s1529_s16 = smov 8  }
  0x46   : > { %1237 = dma.hbm_to_vmem [thread:$0]  (!%p1650_p7), %s1648_s29, 8192, %s1654_s13, %s1656_s15, %s1528_s12, %s1528_s12, %s1529_s16  }
  0x47   : > { %p1813_p12 = scmp.ne.s32.totalorder %s1810_s27, 0 }
  0x48   : > { %s250_s17 = sand.u32 (!%p1813_p12), 1, %s1506_s19   ;;  %p1814_p0 = scmp.ne.s32.totalorder (!%p1813_p12), %s1809_s26, 0 }
  0x49   : > { %248 = sbr.rel (%p1813_p12) target bundleno = 606 (0x25e), region = 40  ;;  %s1106_s18 = sshll.u32 (!%p1813_p12), %s250_s17, 9 }
  0x4a   : > { %s251_s24 = scalar_lea.sflag (!%p1813_p12), [#allocation4], %s250_s17  ;;  %s1687_s28 = scalar_lea.vmem (!%p1813_p12), [#allocation3], %s1106_s18 }
  0x50   : > { %1493 = dma.done.wait (%p1814_p0), %s251_s24, 8192  }
  0x51   : > { %1495 = vsyncadd (%p1814_p0), %s251_s24, 4294959104  ;;  %p1815_p6 = scmp.ne.s32.totalorder %s1808_s25, 0 }
  0x53   : > { %1497 = dma.done.wait (%p1815_p6), [#allocation6], 2048  }
  0x54   : > { %1499 = vsyncadd (%p1815_p6), [#allocation6], 4294965248  ;;  %s1108_s27 = sshll.u32 %s1514_s21, 2  ;;  %p1110_p1 = scmp.ne.s32.totalorder %s1514_s21, 0 }
  0x55   : > { %p296_p7 = scmp.lt.s32.totalorder %s1108_s27, 7  ;;  %v315_v0 = vlaneseq (!%p1110_p1)  ;;  %v313_v2 = vld [vmem:[%s1800_s2] sm:$0x3] (!%p1110_p1) }
  0x56   : > { %312 = sbr.rel (%p1110_p1) target bundleno = 94 (0x5e), region = 52 }
  0x57   : > { %s1824_s27 = smov (!%p296_p7, %s1108_s27), 7  ;;  %v316_v1 = vshrl.u32 (!%p1110_p1), %v315_v0, 7 }
  0x58   : > { %s1109_s29 = sshll.u32 %s1824_s27, 2 }
  0x59   : > { %s1701_s15 = scalar_lea.vmem %s1798_s0, %s1109_s29  ;;  %v317_v3 = vsub.s32 (!%p1110_p1), 0, %v316_v1  ;;  %v321_v4 = vsub.s32 (!%p1110_p1), 1, %v316_v1 }
  0x5b   : > { %v318_v5 = vrot.slane (!%p1110_p1), %v313_v2, %v317_v3  ;;  %v322_v6 = vrot.slane (!%p1110_p1), %v313_v2, %v321_v4 }
  0x5d   : > { %325 = vst [vmem:[#allocation2] sm:$0xff] %v318_v5  ;;  %326 = vst [vmem:[#allocation2 + $0x8] sm:$0xff] %v322_v6 }
  0x5e PF: > { %v1294_v7 = vld [vmem:[%s1687_s28 + $0x4] ss:$8 sps:$4 sm:$0xff]   ;;  %v1298_v9 = vld [vmem:[%s1687_s28] ss:$8 sps:$4 sm:$0xff]   ;;  %v1300_v11 = vld [vmem:[%s1687_s28 + $0x14] ss:$8 sps:$4 sm:$0xff]  }
  0x5f   : > { %v1296_v8 = vld [vmem:[%s1687_s28 + $0x104] ss:$8 sps:$4 sm:$0xff]   ;;  %729 = vmatprep.subr.bf16.mxu0 %v1294_v7  ;;  %v1299_v10 = vld [vmem:[%s1687_s28 + $0x100] ss:$8 sps:$4 sm:$0xff]   ;;  %v1302_v12 = vld [vmem:[%s1687_s28 + $0x114] ss:$8 sps:$4 sm:$0xff]  }
  0x60   : > { %770 = vmatprep.subr.bf16.mxu1 %v1296_v8  ;;  %730 = vmatpush1.bf16.msra.mxu0 %v1298_v9  ;;  %v1304_v13 = vld [vmem:[%s1687_s28 + $0x10] ss:$8 sps:$4 sm:$0xff]   ;;  %v1306_v15 = vld [vmem:[%s1687_s28 + $0x24] ss:$8 sps:$4 sm:$0xff]   ;;  %v1310_v17 = vld [vmem:[%s1687_s28 + $0x20] ss:$8 sps:$4 sm:$0xff]  }
  0x61   : > { %771 = vmatpush1.bf16.msra.mxu1 %v1299_v10  ;;  %731 = vmatprep.subr.bf16.mxu0 %v1300_v11  ;;  %v1305_v14 = vld [vmem:[%s1687_s28 + $0x110] ss:$8 sps:$4 sm:$0xff]   ;;  %v1308_v16 = vld [vmem:[%s1687_s28 + $0x124] ss:$8 sps:$4 sm:$0xff]   ;;  %v1311_v18 = vld [vmem:[%s1687_s28 + $0x120] ss:$8 sps:$4 sm:$0xff]  }
  0x62   : > { %772 = vmatprep.subr.bf16.mxu1 %v1302_v12  ;;  %v1312_v19 = vld [vmem:[%s1687_s28 + $0x34] ss:$8 sps:$4 sm:$0xff]   ;;  %v1316_v21 = vld [vmem:[%s1687_s28 + $0x30] ss:$8 sps:$4 sm:$0xff]   ;;  %v1318_v23 = vld [vmem:[%s1687_s28 + $0x44] ss:$8 sps:$4 sm:$0xff]  }
  0x63   : > { %v1314_v20 = vld [vmem:[%s1687_s28 + $0x134] ss:$8 sps:$4 sm:$0xff]   ;;  %v1317_v22 = vld [vmem:[%s1687_s28 + $0x130] ss:$8 sps:$4 sm:$0xff]   ;;  %v1320_v24 = vld [vmem:[%s1687_s28 + $0x144] ss:$8 sps:$4 sm:$0xff]  }
  0x64   : > { %732 = vmatpush1.bf16.msra.mxu0 %v1304_v13  ;;  %v1322_v25 = vld [vmem:[%s1687_s28 + $0x40] ss:$8 sps:$4 sm:$0xff]   ;;  %v1324_v27 = vld [vmem:[%s1687_s28 + $0x54] ss:$8 sps:$4 sm:$0xff]   ;;  %v1328_v29 = vld [vmem:[%s1687_s28 + $0x50] ss:$8 sps:$4 sm:$0xff]  }
  0x65   : > { %773 = vmatpush1.bf16.msra.mxu1 %v1305_v14  ;;  %733 = vmatprep.subr.bf16.mxu0 %v1306_v15  ;;  %v1323_v26 = vld [vmem:[%s1687_s28 + $0x140] ss:$8 sps:$4 sm:$0xff]   ;;  %v1326_v28 = vld [vmem:[%s1687_s28 + $0x154] ss:$8 sps:$4 sm:$0xff]   ;;  %v1329_v30 = vld [vmem:[%s1687_s28 + $0x150] ss:$8 sps:$4 sm:$0xff]  }
  0x66   : > { %774 = vmatprep.subr.bf16.mxu1 %v1308_v16  ;;  %v1330_v31 = vld [vmem:[%s1687_s28 + $0x64] ss:$8 sps:$4 sm:$0xff]   ;;  %v1334_v33 = vld [vmem:[%s1687_s28 + $0x60] ss:$8 sps:$4 sm:$0xff]   ;;  %v1336_v35 = vld [vmem:[%s1687_s28 + $0x74] ss:$8 sps:$4 sm:$0xff]  }
  0x67   : > { %v1332_v32 = vld [vmem:[%s1687_s28 + $0x164] ss:$8 sps:$4 sm:$0xff]   ;;  %v1335_v34 = vld [vmem:[%s1687_s28 + $0x160] ss:$8 sps:$4 sm:$0xff]   ;;  %v1338_v36 = vld [vmem:[%s1687_s28 + $0x174] ss:$8 sps:$4 sm:$0xff]  }
  0x68   : > { %734 = vmatpush1.bf16.msra.mxu0 %v1310_v17  ;;  %v1340_v37 = vld [vmem:[%s1687_s28 + $0x70] ss:$8 sps:$4 sm:$0xff]   ;;  %v1342_v39 = vld [vmem:[%s1687_s28 + $0x84] ss:$8 sps:$4 sm:$0xff]   ;;  %v1346_v41 = vld [vmem:[%s1687_s28 + $0x80] ss:$8 sps:$4 sm:$0xff]  }
  0x69   : > { %775 = vmatpush1.bf16.msra.mxu1 %v1311_v18  ;;  %735 = vmatprep.subr.bf16.mxu0 %v1312_v19  ;;  %v1341_v38 = vld [vmem:[%s1687_s28 + $0x170] ss:$8 sps:$4 sm:$0xff]   ;;  %v1344_v40 = vld [vmem:[%s1687_s28 + $0x184] ss:$8 sps:$4 sm:$0xff]   ;;  %v1347_v42 = vld [vmem:[%s1687_s28 + $0x180] ss:$8 sps:$4 sm:$0xff]  }
  0x6a   : > { %776 = vmatprep.subr.bf16.mxu1 %v1314_v20  ;;  %v1348_v43 = vld [vmem:[%s1687_s28 + $0x94] ss:$8 sps:$4 sm:$0xff]   ;;  %v1352_v45 = vld [vmem:[%s1687_s28 + $0x90] ss:$8 sps:$4 sm:$0xff]   ;;  %v1354_v47 = vld [vmem:[%s1687_s28 + $0xa4] ss:$8 sps:$4 sm:$0xff]  }
  0x6b   : > { %v1350_v44 = vld [vmem:[%s1687_s28 + $0x194] ss:$8 sps:$4 sm:$0xff]   ;;  %v1353_v46 = vld [vmem:[%s1687_s28 + $0x190] ss:$8 sps:$4 sm:$0xff]   ;;  %v1356_v48 = vld [vmem:[%s1687_s28 + $0x1a4] ss:$8 sps:$4 sm:$0xff]  }
  0x6c   : > { %736 = vmatpush1.bf16.msra.mxu0 %v1316_v21  ;;  %v1358_v49 = vld [vmem:[%s1687_s28 + $0xa0] ss:$8 sps:$4 sm:$0xff]   ;;  %v1360_v51 = vld [vmem:[%s1687_s28 + $0xb4] ss:$8 sps:$4 sm:$0xff]   ;;  %v1364_v56 = vld [vmem:[%s1687_s28 + $0xb0] ss:$8 sps:$4 sm:$0xff]  }
  0x6d   : > { %777 = vmatpush1.bf16.msra.mxu1 %v1317_v22  ;;  %737 = vmatprep.subr.bf16.mxu0 %v1318_v23  ;;  %v1359_v50 = vld [vmem:[%s1687_s28 + $0x1a0] ss:$8 sps:$4 sm:$0xff]   ;;  %v1362_v52 = vld [vmem:[%s1687_s28 + $0x1b4] ss:$8 sps:$4 sm:$0xff]   ;;  %v1365_v57 = vld [vmem:[%s1687_s28 + $0x1b0] ss:$8 sps:$4 sm:$0xff]  }
  0x6e   : > { %778 = vmatprep.subr.bf16.mxu1 %v1320_v24  ;;  %v329_v53 = vld [vmem:[%s1701_s15] sm:$0xff]  ;;  %v330_v55 = vld [vmem:[%s1701_s15 + $0x8] sm:$0xff]  ;;  %v1366_v59 = vld [vmem:[%s1687_s28 + $0xc4] ss:$8 sps:$4 sm:$0xff]   ;;  %p1179_p4 = scmp.ne.s32.totalorder %s1514_s21, 1 }
  0x6f   : > { %v1112_v54 = vcombine.high %v329_v53, %v329_v53  ;;  %v1114_v58 = vcombine.high %v330_v55, %v330_v55  ;;  %v1368_v60 = vld [vmem:[%s1687_s28 + $0x1c4] ss:$8 sps:$4 sm:$0xff]   ;;  %v1370_v61 = vld [vmem:[%s1687_s28 + $0xc0] ss:$8 sps:$4 sm:$0xff]   ;;  %v1372_v63 = vld [vmem:[%s1687_s28 + $0xd4] ss:$8 sps:$4 sm:$0xff]   ;;  %v1111_v11 = vcombine.low %v329_v53, %v329_v53  ;;  %v1113_v12 = vcombine.low %v330_v55, %v330_v55 }
  0x70   : > { %738 = vmatpush1.bf16.msra.mxu0 %v1322_v25  ;;  %v1371_v62 = vld [vmem:[%s1687_s28 + $0x1c0] ss:$8 sps:$4 sm:$0xff]   ;;  %v1374_v0 = vld [vmem:[%s1687_s28 + $0x1d4] ss:$8 sps:$4 sm:$0xff]   ;;  %v1376_v1 = vld [vmem:[%s1687_s28 + $0xd0] ss:$8 sps:$4 sm:$0xff]  }
  0x71   : > { %779 = vmatpush1.bf16.msra.mxu1 %v1323_v26  ;;  %739 = vmatprep.subr.bf16.mxu0 %v1324_v27  ;;  %v1377_v2 = vld [vmem:[%s1687_s28 + $0x1d0] ss:$8 sps:$4 sm:$0xff]   ;;  %v1378_v3 = vld [vmem:[%s1687_s28 + $0xe4] ss:$8 sps:$4 sm:$0xff]   ;;  %v1382_v5 = vld [vmem:[%s1687_s28 + $0xe0] ss:$8 sps:$4 sm:$0xff]  }
  0x72   : > { %780 = vmatprep.subr.bf16.mxu1 %v1326_v28  ;;  %761 = vmatprep.mubr.bf16.mxu0 %v1112_v54  ;;  %v1380_v4 = vld [vmem:[%s1687_s28 + $0x1e4] ss:$8 sps:$4 sm:$0xff]   ;;  %v1383_v6 = vld [vmem:[%s1687_s28 + $0x1e0] ss:$8 sps:$4 sm:$0xff]   ;;  %v1384_v7 = vld [vmem:[%s1687_s28 + $0xf4] ss:$8 sps:$4 sm:$0xff]  }
  0x73   : > { %802 = vmatprep.mubr.bf16.mxu1 %v1114_v58  ;;  %v1386_v8 = vld [vmem:[%s1687_s28 + $0x1f4] ss:$8 sps:$4 sm:$0xff]   ;;  %v1388_v9 = vld [vmem:[%s1687_s28 + $0xf0] ss:$8 sps:$4 sm:$0xff]   ;;  %v1394_v27 = vld [vmem:[#allocation5 + $0x40] sm:$0xff] (!%p1179_p4)  }
  0x74   : > { %740 = vmatpush1.bf16.msra.mxu0 %v1328_v29  ;;  %v1389_v10 = vld [vmem:[%s1687_s28 + $0x1f0] ss:$8 sps:$4 sm:$0xff]   ;;  %v1395_v28 = vld [vmem:[#allocation5] sm:$0xff] (!%p1179_p4)   ;;  %v1396_v29 = vld [vmem:[#allocation5 + $0x48] sm:$0xff] (!%p1179_p4)  }
  0x75   : > { %781 = vmatpush1.bf16.msra.mxu1 %v1329_v30  ;;  %741 = vmatprep.subr.bf16.mxu0 %v1330_v31  ;;  %v327_v14 = vld [vmem:[#allocation2] sm:$0xff]  ;;  %v328_v18 = vld [vmem:[#allocation2 + $0x8] sm:$0xff]  ;;  %v1397_v30 = vld [vmem:[#allocation5 + $0x8] sm:$0xff] (!%p1179_p4)  }
  0x76   : > { %782 = vmatprep.subr.bf16.mxu1 %v1332_v32  ;;  %v1398_v31 = vld [vmem:[#allocation5 + $0x50] sm:$0xff] (!%p1179_p4)  }
  0x77   : > { %v1399_v32 = vld [vmem:[#allocation5 + $0x10] sm:$0xff] (!%p1179_p4)  }
  0x78   : > { %742 = vmatpush1.bf16.msra.mxu0 %v1334_v33  ;;  %v1400_v33 = vld [vmem:[#allocation5 + $0x58] sm:$0xff] (!%p1179_p4)  }
  0x79   : > { %783 = vmatpush1.bf16.msra.mxu1 %v1335_v34  ;;  %743 = vmatprep.subr.bf16.mxu0 %v1336_v35  ;;  %v1401_v34 = vld [vmem:[#allocation5 + $0x18] sm:$0xff] (!%p1179_p4)   ;;  %v1402_v35 = vld [vmem:[#allocation5 + $0x60] sm:$0xff] (!%p1179_p4)  }
  0x7a   : > { %784 = vmatprep.subr.bf16.mxu1 %v1338_v36  ;;  %v1403_v36 = vld [vmem:[#allocation5 + $0x20] sm:$0xff] (!%p1179_p4)  }
  0x7c   : > { %744 = vmatpush1.bf16.msra.mxu0 %v1340_v37  ;;  %v1404_v37 = vld [vmem:[#allocation5 + $0x68] sm:$0xff] (!%p1179_p4)  }
  0x7d   : > { %785 = vmatpush1.bf16.msra.mxu1 %v1341_v38  ;;  %745 = vmatprep.subr.bf16.mxu0 %v1342_v39 }
  0x7e   : > { %786 = vmatprep.subr.bf16.mxu1 %v1344_v40  ;;  %v1405_v40 = vld [vmem:[#allocation5 + $0x28] sm:$0xff] (!%p1179_p4)  }
  0x80   : > { %746 = vmatpush1.bf16.msra.mxu0 %v1346_v41  ;;  %v1406_v41 = vld [vmem:[#allocation5 + $0x70] sm:$0xff] (!%p1179_p4)  }
  0x81   : > { %787 = vmatpush1.bf16.msra.mxu1 %v1347_v42  ;;  %747 = vmatprep.subr.bf16.mxu0 %v1348_v43  ;;  %v1407_v42 = vld [vmem:[#allocation5 + $0x30] sm:$0xff] (!%p1179_p4)   ;;  %v1408_v43 = vld [vmem:[#allocation5 + $0x78] sm:$0xff] (!%p1179_p4)  }
  0x82   : > { %788 = vmatprep.subr.bf16.mxu1 %v1350_v44  ;;  %v1409_v44 = vld [vmem:[#allocation5 + $0x38] sm:$0xff] (!%p1179_p4)  }
  0x84   : > { %748 = vmatpush1.bf16.msra.mxu0 %v1352_v45 }
  0x85   : > { %789 = vmatpush1.bf16.msra.mxu1 %v1353_v46  ;;  %749 = vmatprep.subr.bf16.mxu0 %v1354_v47 }
  0x86   : > { %790 = vmatprep.subr.bf16.mxu1 %v1356_v48  ;;  %v1180_v48 = vld [vmem:[%s1802_s4] ss:$0 sm:$0xff] (!%p1179_p4) }
  0x88   : > { %750 = vmatpush1.bf16.msra.mxu0 %v1358_v49 }
  0x89   : > { %791 = vmatpush1.bf16.msra.mxu1 %v1359_v50  ;;  %751 = vmatprep.subr.bf16.mxu0 %v1360_v51 }
  0x8a   : > { %792 = vmatprep.subr.bf16.mxu1 %v1362_v52 }
  0x8c   : > { %752 = vmatpush1.bf16.msra.mxu0 %v1364_v56 }
  0x8d   : > { %793 = vmatpush1.bf16.msra.mxu1 %v1365_v57  ;;  %753 = vmatprep.subr.bf16.mxu0 %v1366_v59 }
  0x8e   : > { %794 = vmatprep.subr.bf16.mxu1 %v1368_v60 }
  0x90   : > { %754 = vmatpush1.bf16.msra.mxu0 %v1370_v61 }
  0x91   : > { %795 = vmatpush1.bf16.msra.mxu1 %v1371_v62  ;;  %755 = vmatprep.subr.bf16.mxu0 %v1372_v63 }
  0x92   : > { %796 = vmatprep.subr.bf16.mxu1 %v1374_v0 }
  0x94   : > { %756 = vmatpush1.bf16.msra.mxu0 %v1376_v1 }
  0x95   : > { %797 = vmatpush1.bf16.msra.mxu1 %v1377_v2  ;;  %757 = vmatprep.subr.bf16.mxu0 %v1378_v3 }
  0x96   : > { %798 = vmatprep.subr.bf16.mxu1 %v1380_v4 }
  0x98   : > { %758 = vmatpush1.bf16.msra.mxu0 %v1382_v5 }
  0x99   : > { %799 = vmatpush1.bf16.msra.mxu1 %v1383_v6  ;;  %759 = vmatprep.subr.bf16.mxu0 %v1384_v7 }
  0x9a   : > { %800 = vmatprep.subr.bf16.mxu1 %v1386_v8 }
  0x9c   : > { %760 = vmatpush1.bf16.msra.mxu0 %v1388_v9 }
  0x9d   : > { %801 = vmatpush1.bf16.msra.mxu1 %v1389_v10  ;;  %1202 = vmatprep.subr.bf16.mxu0 (!%p1179_p4), %v1394_v27 }
  0x9f   : > { %762 = vmatmul.mubr.bf16.vlgmr.msra.gmra.mrb[0].mxu0 %v1111_v11 }
  0xa0   : > { %803 = vmatmul.mubr.bf16.vlgmr.msra.gmra.mrb[0].mxu1 %v1113_v12  ;;  %1203 = vmatpush3.bf16.msra.mxu0 (!%p1179_p4), %v1395_v28 }
  0xa1   : > { %1204 = vmatprep.subr.bf16.mxu0 (!%p1179_p4), %v1396_v29 }
  0xa4   : > { %1205 = vmatpush3.bf16.msra.mxu0 (!%p1179_p4), %v1397_v30 }
  0xa5   : > { %1206 = vmatprep.subr.bf16.mxu0 (!%p1179_p4), %v1398_v31 }
  0xa8   : > { %1207 = vmatpush3.bf16.msra.mxu0 (!%p1179_p4), %v1399_v32 }
  0xa9   : > { %1208 = vmatprep.subr.bf16.mxu0 (!%p1179_p4), %v1400_v33 }
  0xac   : > { %1209 = vmatpush3.bf16.msra.mxu0 (!%p1179_p4), %v1401_v34 }
  0xad   : > { %1210 = vmatprep.subr.bf16.mxu0 (!%p1179_p4), %v1402_v35 }
  0xb0   : > { %1211 = vmatpush3.bf16.msra.mxu0 (!%p1179_p4), %v1403_v36 }
  0xb1   : > { %1212 = vmatprep.subr.bf16.mxu0 (!%p1179_p4), %v1404_v37 }
  0xb4   : > { %1213 = vmatpush3.bf16.msra.mxu0 (!%p1179_p4), %v1405_v40 }
  0xb5   : > { %1214 = vmatprep.subr.bf16.mxu0 (!%p1179_p4), %v1406_v41 }
  0xb8   : > { %1215 = vmatpush3.bf16.msra.mxu0 (!%p1179_p4), %v1407_v42 }
  0xb9   : > { %1216 = vmatprep.subr.bf16.mxu0 (!%p1179_p4), %v1408_v43 }
  0xbc   : > { %1217 = vmatpush3.bf16.msra.mxu0 (!%p1179_p4), %v1409_v44 }
 0x172   : > { %v763_v13 = vpop.f32.mrb[0].mxu0 }
 0x173   : > { %v804_v15 = vpop.f32.mrb[0].mxu1  ;;  %v765_v17 = vpop.f32.mrb[1].mxu0  ;;  %818 = sbr.rel (%p1179_p4) target bundleno = 606 (0x25e), region = 56 }
 0x174   : > { %v805_v16 = vadd.f32 %v804_v15, %v763_v13  ;;  %v806_v19 = vpop.f32.mrb[1].mxu1  ;;  %v767_v21 = vpop.f32.mrb[2].mxu0 }
 0x175   : > { %v807_v20 = vadd.f32 %v806_v19, %v765_v17  ;;  %v808_v22 = vpop.f32.mrb[2].mxu1  ;;  %v768_v24 = vpop.f32.mrb[3].mxu0 }
 0x176   : > { %v811_v23 = vadd.f32 %v805_v16, %v327_v14  ;;  %v809_v25 = vpop.f32.mrb[3].mxu1 }
 0x177   : > { %v812_v26 = vadd.f32 %v807_v20, %v328_v18 }
 0x178   : > { %813 = vst [vmem:[#allocation2] sm:$0xff] %v811_v23 }
 0x179   : > { %814 = vst [vmem:[#allocation2 + $0x8] sm:$0xff] %v812_v26 }
 0x17f   : > { %v819_v45 = vld [vmem:[#allocation2] sm:$0xff] }
 0x180   : > { %v820_v38 = vld [vmem:[#allocation2 + $0x8] sm:$0xff]  ;;  %v821_v46 = vpack.c.bf16 %v819_v45, %v819_v45 }
 0x181   : > { %v822_v39 = vpack.c.bf16 %v820_v38, %v820_v38 }
 0x183   : > { %990 = vmatprep.mubr.bf16.mxu0 %v822_v39 }
 0x184   : > { %991 = vmatmul.mubr.bf16.vlgmr.msra.gmra.mrb[0].mxu0 %v821_v46 }
 0x257   : > { %v1218_v47 = vpop.f32.mrb[0].mxu0 }
 0x258   : > { %v1219_v49 = vpop.f32.mrb[1].mxu0 }
 0x259   : > { %v1220_v50 = vadd.f32 %v1219_v49, %v1218_v47  ;;  %v1221_v51 = vpop.f32.mrb[2].mxu0 }
 0x25a   : > { %v1222_v52 = vpop.f32.mrb[3].mxu0 }
 0x25b   : > { %v993_v53 = vadd.f32 %v1220_v50, %v1180_v48 }
 0x25d   : > { %998 = vst [vmem:[%s1803_s5] sm:$0xff] %v993_v53 }
 0x25e PF: > { %s19_s23 = sadd.s32 1, %s1522_s23   ;;  %s1816_s18 = smov %s1506_s19 }
 0x25f   : > { %p16_p5 = scmp.ge.s32.totalorder %s19_s23, 4   ;;  %s1817_s19 = smov %s1510_s20 }
 0x260   : > { %s1818_s20 = smov %s1643_s10  ;;  %s1819_s21 = smov %s1518_s22 }
 0x261   : > { %s1820_s22 = smov %s1822_s6  ;;  %18 = sbr.rel (!%p16_p5) target bundleno = 5 (0x5), region = 95 }
 0x268   :  { %1018 = vsyncpa [#allocation4], 1 }
 0x269   :  { %1020 = vsyncpa [#allocation4 + $0x1], 1 }
 0x26a   :  { %1021 = vsyncpa [#allocation6], 1 }

</bundles_post_ra>
